<compile_context>
chip_gen: v5e
topology: v5e:2x2
jax: 0.10.0
libtpu: 0.0.40
codegen_flags: <defaults>
</compile_context>

<pallas_src>
import functools

import jax
import jax.numpy as jnp
from jax import lax
from jax.experimental import pallas as pl
from jax.experimental.pallas import tpu as pltpu


# Scoped-VMEM limit requested from Mosaic: below v7x's 64 MiB physical VMEM,
# comfortably inside v5e/v6e's 128 MiB, above v5e's 16 MiB default.
_VMEM_LIMIT_BYTES = 48 * 1024 * 1024
# Budget for one tile's full working set (f32 temporaries + double-buffered
# inputs + output row); leaves ~2x headroom under _VMEM_LIMIT_BYTES for
# compiler temporaries and pipelining.
_TILE_BUDGET_BYTES = 20 * 1024 * 1024


def _pick_spatial_tile(hw_per_split, c, itemsize,
                       budget_bytes=_TILE_BUDGET_BYTES):
    """Largest lane tile (multiple of 128) whose f32 working set fits budget.

    The kernel keeps roughly 6 live (C, T) f32-sized temporaries (x after the
    cast, e1, p1, exp(p1), the class iota, one where/select temp), plus the
    double-buffered native-dtype pred tile, the int32 target row and the f32
    output row — so the per-lane-column cost is input-dtype-robust.
    """
    per_col = 24 * c                 # ~6 live f32 (C, T) temporaries
    per_col += 2 * c * itemsize      # double-buffered pred input tile
    per_col += 16                    # double-buffered int32 tgt row + f32 out
    t_max = max(128, (budget_bytes // per_col) // 128 * 128)
    t_need = ((hw_per_split + 127) // 128) * 128
    return min(t_max, t_need)


def _make_focal_kernel(num_classes, alpha, gamma, ignore_idx, reduction):
    use_int_pow = float(gamma) == int(gamma)
    int_gamma = int(gamma) if use_int_pow else None
    alpha = float(alpha)

    def kernel(pred_ref, tgt_ref, out_ref):
        x = pred_ref[0].astype(jnp.float32)     # (C, T) — classes on sublanes
        tgt = tgt_ref[0]                        # (1, T) int32
        c, t = x.shape

        # Boolean one-hot mask and per-column validity: no float one-hot,
        # no (C,T) cast/multiply, no extra sublane reduction.  Out-of-range
        # labels (including the wrapper's padding label == num_classes) and
        # ignore_idx contribute zero, matching label_to_onehot semantics.
        cls_ids = lax.broadcasted_iota(jnp.int32, (c, t), 0)
        sel = cls_ids == tgt                    # (C, T) bool
        in_range = (tgt >= 0) & (tgt < c)       # (1, T) bool
        if ignore_idx is not None:
            in_range = in_range & (tgt != ignore_idx)

        if num_classes == 1:
            # forward(): sigmoid; focal_loss(): sigmoid again.
            # TODO(synk): label_to_onehot() is not given for the binary case;
            # targets are treated as class indices (channel 0 <-> tgt == 0).
            log_p = jax.nn.log_sigmoid(jax.nn.sigmoid(x))            # (1, T)
            log_p_t = jnp.sum(jnp.where(sel, log_p, 0.0),
                              axis=0, keepdims=True)
        else:
            # forward(): softmax over the class (sublane) axis.  Exact
            # reciprocal so no approximation error propagates through the
            # second softmax and the log.
            m1 = jnp.max(x, axis=0, keepdims=True)
            e1 = jnp.exp(x - m1)
            p1 = e1 * (1.0 / jnp.sum(e1, axis=0, keepdims=True))     # (C, T)
            # focal_loss(): softmax again, done in log space.  p1 is in
            # [0, 1] so exp(p1) is in [1, e]: no max-shift is needed (saves
            # an XLU max and a (C,T) subtract), and only one log per column
            # survives (EUP saver).
            lse = jnp.log(jnp.sum(jnp.exp(p1), axis=0, keepdims=True))  # (1,T)
            p1_t = jnp.sum(jnp.where(sel, p1, 0.0),
                           axis=0, keepdims=True)                       # (1,T)
            log_p_t = p1_t - lse                                        # (1,T)

        p_t = jnp.exp(log_p_t)                  # prob of the target class
        one_minus = 1.0 - p_t
        if use_int_pow:
            focal = lax.integer_pow(one_minus, int_gamma)  # gamma=2 -> 1 mul
        else:
            focal = one_minus ** gamma
        loss_row = jnp.where(in_range, alpha * (focal * (-log_p_t)), 0.0)

        # TODO(synk): for very small C (e.g. 4) the class-on-sublane layout
        # leaves vregs partially empty; if compute ever binds here, pack
        # 8//C spatial columns onto the sublane axis with a matching mask.
        if reduction == "none":
            out_ref[...] = loss_row[None].astype(out_ref.dtype)
        else:
            # Lane-parallel partial-sum accumulator, resident across the
            # HW-tile (last, "arbitrary") grid axis; the cheap final reduce
            # happens in the JAX wrapper.
            @pl.when(pl.program_id(2) == 0)
            def _():
                out_ref[...] = jnp.zeros_like(out_ref)

            out_ref[...] += loss_row[None]

    return kernel


@functools.partial(
    jax.jit,
    static_argnames=("num_classes", "alpha", "gamma", "ignore_idx", "reduction"),
)
def focal_loss_pallas(pred, target, *, num_classes, alpha=0.25, gamma=2,
                      ignore_idx=None, reduction="mean"):
    """pred: (N, C, H, W) float (any dtype), target: (N, H, W) int class ids."""
    if reduction not in ("none", "mean", "sum"):
        raise NotImplementedError(f"Invalid reduction mode: {reduction}")
    N, C, H, W = pred.shape
    assert C == num_classes, "class axis of pred must equal num_classes"
    HW = H * W

    # v7x megacore: with a single batch the parallel batch axis can't feed
    # both TensorCores, so add a coarse parallel split of the spatial axis.
    P = 2 if (reduction != "none" and N == 1 and HW >= 256) else 1

    hw_per_split = pl.cdiv(HW, P)
    T = _pick_spatial_tile(hw_per_split, C, jnp.dtype(pred.dtype).itemsize)
    n_t = pl.cdiv(hw_per_split, T)
    HW_pad = P * n_t * T

    pred3 = pred.reshape(N, C, HW)                       # keep native dtype
    tgt3 = target.reshape(N, 1, HW).astype(jnp.int32)
    if HW_pad != HW:
        # Pad the ragged tail; padded labels are out of range so the in-range
        # mask zeroes their contribution ('none' slices them off below).
        pad = HW_pad - HW
        pred3 = jnp.pad(pred3, ((0, 0), (0, 0), (0, pad)))
        tgt3 = jnp.pad(tgt3, ((0, 0), (0, 0), (0, pad)),
                       constant_values=num_classes)

    kernel = _make_focal_kernel(num_classes, alpha, gamma, ignore_idx, reduction)

    # TODO(synk): for very large C the (1, C, T) block turns into C small
    # strided row-DMAs; a channels-last layout would be preferable there.
    pred_spec = pl.BlockSpec((1, C, T), lambda b, p, t: (b, 0, p * n_t + t))
    tgt_spec = pl.BlockSpec((1, 1, T), lambda b, p, t: (b, 0, p * n_t + t))

    if reduction == "none":
        out_shape = jax.ShapeDtypeStruct((N, 1, HW_pad), jnp.float32)
        out_spec = pl.BlockSpec((1, 1, T), lambda b, p, t: (b, 0, p * n_t + t))
        dim_sem = ("parallel", "parallel", "parallel")
    else:
        # Per-(batch, split) lane-dense partial sums, resident across the
        # HW-tile (reduction) axis which is last in the grid.
        out_shape = jax.ShapeDtypeStruct((N * P, 1, T), jnp.float32)
        out_spec = pl.BlockSpec((1, 1, T), lambda b, p, t: (b * P + p, 0, 0))
        dim_sem = ("parallel", "parallel", "arbitrary")

    out = pl.pallas_call(
        kernel,
        out_shape=out_shape,
        grid_spec=pltpu.PrefetchScalarGridSpec(
            num_scalar_prefetch=0,
            grid=(N, P, n_t),
            in_specs=[pred_spec, tgt_spec],
            out_specs=out_spec,
        ),
        compiler_params=pltpu.CompilerParams(
            dimension_semantics=dim_sem,
            vmem_limit_bytes=_VMEM_LIMIT_BYTES,
        ),
    )(pred3, tgt3)

    if reduction == "none":
        return out[:, 0, :HW].reshape(N, H, W)
    total = jnp.sum(out)
    if reduction == "mean":
        # Matches the reference's loss.mean(): divides by N*H*W including
        # ignored / out-of-range pixels.
        return total / jnp.float32(N * HW)
    return total  # 'sum'


def focal_loss_reference(pred, target, *, num_classes, alpha=0.25, gamma=2,
                         ignore_idx=None, reduction="mean"):
    """Pure-JAX reference mirroring the PyTorch code (incl. double softmax /
    double sigmoid)."""
    pred = pred.astype(jnp.float32)
    if num_classes == 1:
        p = jax.nn.sigmoid(jax.nn.sigmoid(pred))
    else:
        p = jax.nn.softmax(jax.nn.softmax(pred, axis=1), axis=1)
    onehot = jax.nn.one_hot(target, num_classes, axis=1, dtype=jnp.float32)
    if ignore_idx is not None:
        onehot = onehot * (target != ignore_idx)[:, None, :, :].astype(jnp.float32)
    fl = alpha * (1.0 - p) ** gamma * (-jnp.log(p)) * onehot
    fl = jnp.sum(fl, axis=1)  # (N, H, W)
    if reduction == "mean":
        return jnp.mean(fl)
    elif reduction == "sum":
        return jnp.sum(fl)
    return fl


if __name__ == "__main__":
    # Small shapes consistent with the module: batch=2, classes=4, spatial 16x16.
    N, C, H, W = 2, 4, 16, 16
    key = jax.random.PRNGKey(0)
    k_pred, k_tgt = jax.random.split(key)

    pred = jax.random.normal(k_pred, (N, C, H, W), dtype=jnp.float32)
    target = jax.random.randint(k_tgt, (N, H, W), 0, C, dtype=jnp.int32)

    loss = focal_loss_pallas(pred, target, num_classes=C, alpha=0.25, gamma=2,
                             ignore_idx=None, reduction="mean")
    loss = jax.block_until_ready(loss)

    ref = focal_loss_reference(pred, target, num_classes=C, alpha=0.25, gamma=2,
                               ignore_idx=None, reduction="mean")
    ref = jax.block_until_ready(ref)
    assert jnp.allclose(loss, ref, rtol=2e-4, atol=1e-6), (loss, ref)

    # Also exercise the 'none' (per-pixel) path.
    loss_none = focal_loss_pallas(pred, target, num_classes=C, alpha=0.25,
                                  gamma=2, ignore_idx=None, reduction="none")
    loss_none = jax.block_until_ready(loss_none)
    ref_none = focal_loss_reference(pred, target, num_classes=C, alpha=0.25,
                                    gamma=2, ignore_idx=None, reduction="none")
    assert jnp.allclose(loss_none, ref_none, rtol=2e-4, atol=1e-6)

    print("KERNEL_OK")
</pallas_src>

<mosaic_0001>
module attributes {stable_mosaic.version = 11 : i64} {
  func.func @kernel(%arg0: i32, %arg1: i32, %arg2: i32, %arg3: memref<1x4x256xf32, #tpu.memory_space<vmem>>, %arg4: memref<1x1x256xi32, #tpu.memory_space<vmem>>, %arg5: memref<1x1x256xf32, #tpu.memory_space<vmem>>) attributes {dimension_semantics = [#tpu.dimension_semantics<parallel>, #tpu.dimension_semantics<parallel>, #tpu.dimension_semantics<arbitrary>], iteration_bounds = array<i64: 2, 1, 1>, scalar_prefetch = 0 : i64, scratch_operands = 0 : i64, tpu.core_type = #tpu.core_type<tc>, window_params = [{transform_indices = @transform_0, window_bounds = array<i64: 1, 4, 256>}, {transform_indices = @transform_1, window_bounds = array<i64: 1, 1, 256>}, {transform_indices = @transform_2, window_bounds = array<i64: 1, 1, 256>}]} {
    %c0 = arith.constant 0 : index
    %c0_0 = arith.constant 0 : index
    %c0_1 = arith.constant 0 : index
    %0 = vector.load %arg3[%c0, %c0_0, %c0_1] : memref<1x4x256xf32, #tpu.memory_space<vmem>>, vector<1x4x256xf32>
    %1 = vector.shape_cast %0 : vector<1x4x256xf32> to vector<4x256xf32>
    %c0_2 = arith.constant 0 : index
    %c0_3 = arith.constant 0 : index
    %c0_4 = arith.constant 0 : index
    %2 = vector.load %arg4[%c0_2, %c0_3, %c0_4] : memref<1x1x256xi32, #tpu.memory_space<vmem>>, vector<1x1x256xi32>
    %3 = vector.shape_cast %2 : vector<1x1x256xi32> to vector<1x256xi32>
    %4 = tpu.iota {dimensions = array<i32: 0>} : vector<4x256xi32>
    %5 = vector.broadcast %3 : vector<1x256xi32> to vector<4x256xi32>
    %6 = arith.cmpi eq, %4, %5 : vector<4x256xi32>
    %c0_i32 = arith.constant 0 : i32
    %7 = vector.broadcast %c0_i32 : i32 to vector<1x256xi32>
    %8 = arith.cmpi sge, %3, %7 : vector<1x256xi32>
    %c4_i32 = arith.constant 4 : i32
    %9 = vector.broadcast %c4_i32 : i32 to vector<1x256xi32>
    %10 = arith.cmpi slt, %3, %9 : vector<1x256xi32>
    %11 = arith.andi %8, %10 : vector<1x256xi1>
    %cst = arith.constant dense<0xFF800000> : vector<256xf32>
    %12 = vector.multi_reduction <maximumf>, %1, %cst [0] : vector<4x256xf32> to vector<256xf32>
    %13 = vector.shape_cast %12 : vector<256xf32> to vector<1x256xf32>
    %14 = vector.broadcast %13 : vector<1x256xf32> to vector<4x256xf32>
    %15 = arith.subf %1, %14 : vector<4x256xf32>
    %16 = math.exp %15 : vector<4x256xf32>
    %cst_5 = arith.constant dense<0.000000e+00> : vector<256xf32>
    %17 = vector.multi_reduction <add>, %16, %cst_5 [0] : vector<4x256xf32> to vector<256xf32>
    %18 = vector.shape_cast %17 : vector<256xf32> to vector<1x256xf32>
    %cst_6 = arith.constant 1.000000e+00 : f32
    %19 = vector.broadcast %cst_6 : f32 to vector<1x256xf32>
    %20 = arith.divf %19, %18 : vector<1x256xf32>
    %21 = vector.broadcast %20 : vector<1x256xf32> to vector<4x256xf32>
    %22 = arith.mulf %16, %21 : vector<4x256xf32>
    %23 = math.exp %22 : vector<4x256xf32>
    %cst_7 = arith.constant dense<0.000000e+00> : vector<256xf32>
    %24 = vector.multi_reduction <add>, %23, %cst_7 [0] : vector<4x256xf32> to vector<256xf32>
    %25 = vector.shape_cast %24 : vector<256xf32> to vector<1x256xf32>
    %26 = math.log %25 : vector<1x256xf32>
    %cst_8 = arith.constant 0.000000e+00 : f32
    %27 = vector.broadcast %cst_8 : f32 to vector<4x256xf32>
    %28 = arith.select %6, %22, %27 : vector<4x256xi1>, vector<4x256xf32>
    %cst_9 = arith.constant dense<0.000000e+00> : vector<256xf32>
    %29 = vector.multi_reduction <add>, %28, %cst_9 [0] : vector<4x256xf32> to vector<256xf32>
    %30 = vector.shape_cast %29 : vector<256xf32> to vector<1x256xf32>
    %31 = arith.subf %30, %26 : vector<1x256xf32>
    %32 = math.exp %31 : vector<1x256xf32>
    %cst_10 = arith.constant 1.000000e+00 : f32
    %33 = vector.broadcast %cst_10 : f32 to vector<1x256xf32>
    %34 = arith.subf %33, %32 : vector<1x256xf32>
    %35 = arith.mulf %34, %34 : vector<1x256xf32>
    %cst_11 = arith.constant 0.000000e+00 : f32
    %36 = vector.broadcast %cst_11 : f32 to vector<1x256xf32>
    %37 = arith.subf %36, %31 : vector<1x256xf32>
    %38 = arith.mulf %35, %37 : vector<1x256xf32>
    %cst_12 = arith.constant 2.500000e-01 : f32
    %39 = vector.broadcast %cst_12 : f32 to vector<1x256xf32>
    %40 = arith.mulf %39, %38 : vector<1x256xf32>
    %cst_13 = arith.constant 0.000000e+00 : f32
    %41 = vector.broadcast %cst_13 : f32 to vector<1x256xf32>
    %42 = arith.select %11, %40, %41 : vector<1x256xi1>, vector<1x256xf32>
    %c0_i32_14 = arith.constant 0 : i32
    %43 = arith.cmpi eq, %arg2, %c0_i32_14 : i32
    %44 = arith.extui %43 : i1 to i32
    %c0_i32_15 = arith.constant 0 : i32
    %45 = arith.cmpi ne, %44, %c0_i32_15 : i32
    scf.if %45 {
      %cst_22 = arith.constant 0.000000e+00 : f32
      %50 = vector.broadcast %cst_22 : f32 to vector<1x1x256xf32>
      %c0_23 = arith.constant 0 : index
      %c0_24 = arith.constant 0 : index
      %c0_25 = arith.constant 0 : index
      %51 = vector.load %arg5[%c0_23, %c0_24, %c0_25] : memref<1x1x256xf32, #tpu.memory_space<vmem>>, vector<1x1x256xf32>
      tpu.vector_store %arg5[%c0_23, %c0_24, %c0_25], %50 {strides = array<i32>} : memref<1x1x256xf32, #tpu.memory_space<vmem>>, vector<1x1x256xf32>,
    } else {
    }
    %c0_16 = arith.constant 0 : index
    %c0_17 = arith.constant 0 : index
    %c0_18 = arith.constant 0 : index
    %46 = vector.load %arg5[%c0_16, %c0_17, %c0_18] : memref<1x1x256xf32, #tpu.memory_space<vmem>>, vector<1x1x256xf32>
    %47 = vector.shape_cast %42 : vector<1x256xf32> to vector<1x1x256xf32>
    %48 = arith.addf %46, %47 : vector<1x1x256xf32>
    %c0_19 = arith.constant 0 : index
    %c0_20 = arith.constant 0 : index
    %c0_21 = arith.constant 0 : index
    %49 = vector.load %arg5[%c0_19, %c0_20, %c0_21] : memref<1x1x256xf32, #tpu.memory_space<vmem>>, vector<1x1x256xf32>
    tpu.vector_store %arg5[%c0_19, %c0_20, %c0_21], %48 {strides = array<i32>} : memref<1x1x256xf32, #tpu.memory_space<vmem>>, vector<1x1x256xf32>,
    return
  }
  func.func @transform_0(%arg0: i32, %arg1: i32, %arg2: i32) -> (i32, i32, i32) {
    %c1_i32 = arith.constant 1 : i32
    %0 = arith.muli %arg1, %c1_i32 : i32
    %1 = arith.addi %0, %arg2 : i32
    %c0_i32 = arith.constant 0 : i32
    %c0_i32_0 = arith.constant 0 : i32
    return %arg0, %c0_i32, %1 : i32, i32, i32
  }
  func.func @transform_1(%arg0: i32, %arg1: i32, %arg2: i32) -> (i32, i32, i32) {
    %c1_i32 = arith.constant 1 : i32
    %0 = arith.muli %arg1, %c1_i32 : i32
    %1 = arith.addi %0, %arg2 : i32
    %c0_i32 = arith.constant 0 : i32
    %c0_i32_0 = arith.constant 0 : i32
    return %arg0, %c0_i32, %1 : i32, i32, i32
  }
  func.func @transform_2(%arg0: i32, %arg1: i32, %arg2: i32) -> (i32, i32, i32) {
    %c1_i32 = arith.constant 1 : i32
    %0 = arith.muli %arg0, %c1_i32 : i32
    %1 = arith.addi %0, %arg1 : i32
    %c0_i32 = arith.constant 0 : i32
    %c0_i32_0 = arith.constant 0 : i32
    %c0_i32_1 = arith.constant 0 : i32
    return %1, %c0_i32, %c0_i32_0 : i32, i32, i32
  }
}

</mosaic_0001>

<bundles_post_ra>
// kernel: focal_loss_pallas.1
= control target key start
LH: loop header
LB: loop body
LE: loop exit
PB: predicated region body
PF: predicated region fallthrough
CT: control target
= control target key end

     0   :  { %s594_s9 = smov 0   ;;  %s596_s10 = smov 0   ;;  %s675_s0 = inlined_call_operand.vmem [shape: f32[2,4,256], index: 0, kind: input, shape index: {}]   ;;  %s676_s1 = inlined_call_operand.vmem [shape: s32[2,1,256], index: 1, kind: input, shape index: {}]   ;;  %s677_s2 = inlined_call_operand.vmem [shape: f32[2,1,256], index: 2, kind: output, shape index: {}]  }
   0x1   :  { %s598_s11 = smov 0  }
   0x2 LB: > { %s31_s12 = sadd.s32 1, %s572_s10  ;;  %p505_p0 = scmp.ge.s32.totalorder %s576_s11, 1  ;;  %s576_s11 = sphi %s598_s11, %s12_s11   ;;  %s572_s10 = sphi %s596_s10, %s685_s10   ;;  %s568_s9 = sphi %s594_s9, %s684_s9  }
   0x3   : > { %p33_p1 = scmp.ge.s32.totalorder %s31_s12, 2  ;;  %p164_p2 = scmp.lt.s32.totalorder %s576_s11, 3 }
   0x5   : > { %s687_s12 = smov (%p33_p1, %s31_s12), 0  ;;  %p165_p3 = pnand %p505_p0, %p164_p2 }
   0x6   : > { %p202_p4 = scmp.lt.s32.totalorder (!%p165_p3), %s568_s9, 1 }
   0x7   : > { %168 = sbr.rel (%p165_p3) target bundleno = 161 (0xa1), region = 28 }
   0xc   : > { %s689_s9 = smov (!%p202_p4, %s568_s9), 1  ;;  %vm246_vm0 = vcmask 1043456   ;;  %v231_v63 = vlaneseq  ;;  %vm392_vm14 = vcmask 1040384  }
   0xd   : > { %s512_s13 = sshll.u32 %s689_s9, 3  ;;  %s508_s17 = sshll.u32 %s689_s9, 1 }
   0xe   : > { %s209_s16 = scalar_lea.vmem %s675_s0, %s512_s13  ;;  %s220_s20 = scalar_lea.vmem %s676_s1, %s508_s17  ;;  %vm647_vm11 = vcmp.lt.s32.totalorder %v231_v63, 256 }
   0xf   : > { %v229_v0 = vld [vmem:[%s209_s16] sm:$0xff]  ;;  %s637_s23 = scalar_lea.vmem %s677_s2, %s508_s17 }
  0x10   : > { %241 = vst [vmem:[#allocation1] ss:$2 sm:$0xff] %v229_v0 }
  0x17   : > { %v242_v1 = vld.sshfl [vmem:[#allocation1] sm:$0xff pattern:$0x75316420]  ;;  %v243_v2 = vld.sshfl [vmem:[#allocation1 + $0x8] sm:$0xff pattern:$0x75316420] }
  0x18   : > { %v247_v3 = vsel %vm246_vm0, %v242_v1, -inf  ;;  %v254_v4 = vsel %vm246_vm0, %v243_v2, -inf  ;;  %v232_v1 = vshrl.u32 %v231_v63, 7 }
  0x19   : > { %v248_v5 = vrot.slane %v247_v3, 4  ;;  %v255_v6 = vrot.slane %v254_v4, 4 }
  0x1b   : > { %v249_v7 = vmax.f32 %v247_v3, %v248_v5  ;;  %v256_v8 = vmax.f32 %v254_v4, %v255_v6 }
  0x1d   : > { %v250_v9 = vrot.slane %v249_v7, 2  ;;  %v257_v10 = vrot.slane %v256_v8, 2 }
  0x1f   : > { %v251_v11 = vmax.f32 %v249_v7, %v250_v9  ;;  %v258_v12 = vmax.f32 %v256_v8, %v257_v10 }
  0x21   : > { %v252_v13 = vrot.slane %v251_v11, 1  ;;  %v259_v14 = vrot.slane %v258_v12, 1 }
  0x23   : > { %v260_v15 = vmax.f32 %v258_v12, %v259_v14  ;;  %v253_v16 = vmax.f32 %v251_v11, %v252_v13 }
  0x25   : > { %v263_v17 = vrot.slane %v260_v15, 4 }
  0x27   : > { %v264_v18 = vsel %vm246_vm0, %v253_v16, %v263_v17  ;;  %v578_v17 = vmov 0.0  }
  0x28   : > { %v266_v19 = vsub.f32 %v229_v0, %v264_v18  ;;  %v628_v0 = vld [vmem:[%s220_s20] sm:$0x3]  ;;  %404 = vst.msk [vmem:[%s637_s23] sm:$0x3] %vm647_vm11, %v578_v17 }
  0x29   : > { %v233_v6 = vperm.slane %v628_v0, 0  ;;  %v234_v7 = vperm.slane %v628_v0, 1  ;;  %vm237_vm12 = vcmp.ge.s32.totalorder %v628_v0, 0  ;;  %vm238_vm13 = vcmp.lt.s32.totalorder %v628_v0, 4 }
  0x2a   : > { %v267_v20 = vmul.f32 1.442695, %v266_v19  ;;  %vm239_vm15 = vmand %vm237_vm12, %vm238_vm13 }
  0x2b   : > { %vm639_vm9 = vcmp.eq.s32.totalorder %v232_v1, %v233_v6  ;;  %vm643_vm10 = vcmp.eq.s32.totalorder %v232_v1, %v234_v7 }
  0x2c   : > { %538 = vpow2.f32 %v267_v20 }
  0x2f   : > { %v405_v63 = vld [vmem:[%s637_s23] sm:$0x3] }
  0x32   : > { %v539_v21 = vpop.eup %538 }
  0x33   : > { %270 = vst [vmem:[#allocation1] ss:$2 sm:$0xff] %v539_v21 }
  0x3a   : > { %v271_v22 = vld.sshfl [vmem:[#allocation1] sm:$0xff pattern:$0x75316420]  ;;  %v272_v23 = vld.sshfl [vmem:[#allocation1 + $0x8] sm:$0xff pattern:$0x75316420] }
  0x3b   : > { %v275_v24 = vsel %vm246_vm0, %v271_v22, 0.0  ;;  %v282_v25 = vsel %vm246_vm0, %v272_v23, 0.0 }
  0x3c   : > { %v276_v26 = vrot.slane %v275_v24, 4  ;;  %v283_v27 = vrot.slane %v282_v25, 4 }
  0x3e   : > { %v277_v28 = vadd.f32 %v276_v26, %v275_v24  ;;  %v284_v29 = vadd.f32 %v283_v27, %v282_v25 }
  0x40   : > { %v278_v30 = vrot.slane %v277_v28, 2  ;;  %v285_v31 = vrot.slane %v284_v29, 2 }
  0x42   : > { %v279_v32 = vadd.f32 %v278_v30, %v277_v28  ;;  %v286_v33 = vadd.f32 %v285_v31, %v284_v29 }
  0x44   : > { %v280_v34 = vrot.slane %v279_v32, 1  ;;  %v287_v35 = vrot.slane %v286_v33, 1 }
  0x46   : > { %v281_v36 = vadd.f32 %v280_v34, %v279_v32  ;;  %v288_v37 = vadd.f32 %v287_v35, %v286_v33 }
  0x48   : > { %540 = vrcp.f32 %v281_v36  ;;  %v315_v45 = vand.u32 2147483648, %v288_v37  ;;  %v313_v47 = vand.u32 2147483647, %v288_v37  ;;  %vm294_vm3 = vweird.f32 %v281_v36 }
  0x49   : > { %542 = vrcp.f32 %v288_v37  ;;  %v300_v49 = vand.u32 2147483648, %v281_v36  ;;  %v298_v50 = vand.u32 2147483647, %v281_v36  ;;  %vm309_vm5 = vweird.f32 %v288_v37 }
  0x4a   : > { %v316_v52 = vor.u32 1.1754944e-38, %v315_v45  ;;  %vm314_vm7 = vcmp.eq.f32.partialorder %v313_v47, 8.507059e+37 }
  0x4b   : > { %v301_v55 = vor.u32 1.1754944e-38, %v300_v49  ;;  %vm299_vm8 = vcmp.eq.f32.partialorder %v298_v50, 8.507059e+37 }
  0x4e   : > { %v541_v38 = vpop.eup %540 }
  0x4f   : > { %v543_v39 = vpop.eup %542  ;;  %v290_v40 = vmul.f32 %v541_v38, %v281_v36  ;;  %vm295_vm1 = vweird.f32 %v541_v38 }
  0x50   : > { %v305_v41 = vmul.f32 %v543_v39, %v288_v37  ;;  %vm310_vm2 = vweird.f32 %v543_v39  ;;  %vm296_vm4 = vmor %vm294_vm3, %vm295_vm1 }
  0x51   : > { %v291_v42 = vsub.f32 1.0, %v290_v40  ;;  %vm311_vm6 = vmor %vm309_vm5, %vm310_vm2 }
  0x52   : > { %v306_v43 = vsub.f32 1.0, %v305_v41 }
  0x53   : > { %v292_v44 = vmul.f32 %v541_v38, %v291_v42 }
  0x54   : > { %v307_v46 = vmul.f32 %v543_v39, %v306_v43 }
  0x55   : > { %v293_v48 = vadd.f32 %v541_v38, %v292_v44 }
  0x56   : > { %v308_v51 = vadd.f32 %v543_v39, %v307_v46 }
  0x57   : > { %v297_v53 = vsel %vm296_vm4, %v541_v38, %v293_v48 }
  0x58   : > { %v312_v54 = vsel %vm311_vm6, %v543_v39, %v308_v51  ;;  %v302_v58 = vsel %vm299_vm8, %v301_v55, %v297_v53 }
  0x59   : > { %v317_v56 = vsel %vm314_vm7, %v316_v52, %v312_v54 }
  0x5a   : > { %v321_v57 = vrot.slane %v317_v56, 4 }
  0x5c   : > { %v322_v59 = vsel %vm246_vm0, %v302_v58, %v321_v57 }
  0x5d   : > { %v324_v60 = vmul.f32 %v539_v21, %v322_v59 }
  0x5f   : > { %v325_v61 = vmul.f32 1.442695, %v324_v60 }
  0x61   : > { %544 = vpow2.f32 %v325_v61 }
  0x67   : > { %v545_v62 = vpop.eup %544 }
  0x68   : > { %328 = vst [vmem:[#allocation1] ss:$2 sm:$0xff] %v545_v62 }
  0x6f   : > { %v329_v2 = vld.sshfl [vmem:[#allocation1] sm:$0xff pattern:$0x75316420]  ;;  %v330_v3 = vld.sshfl [vmem:[#allocation1 + $0x8] sm:$0xff pattern:$0x75316420] }
  0x70   : > { %v333_v4 = vsel %vm246_vm0, %v329_v2, 0.0  ;;  %v340_v5 = vsel %vm246_vm0, %v330_v3, 0.0  ;;  %352 = vst [vmem:[#allocation1] ss:$2 sm:$0xff] %v324_v60 }
  0x71   : > { %v334_v8 = vrot.slane %v333_v4, 4  ;;  %v341_v9 = vrot.slane %v340_v5, 4 }
  0x73   : > { %v335_v10 = vadd.f32 %v334_v8, %v333_v4  ;;  %v342_v11 = vadd.f32 %v341_v9, %v340_v5 }
  0x75   : > { %v336_v14 = vrot.slane %v335_v10, 2  ;;  %v343_v15 = vrot.slane %v342_v11, 2 }
  0x77   : > { %v337_v18 = vadd.f32 %v336_v14, %v335_v10  ;;  %v344_v19 = vadd.f32 %v343_v15, %v342_v11  ;;  %v353_v20 = vld.sshfl [vmem:[#allocation1] sm:$0xff pattern:$0x75316420]  ;;  %v354_v21 = vld.sshfl [vmem:[#allocation1 + $0x8] sm:$0xff pattern:$0x75316420] }
  0x78   : > { %v357_v22 = vsel %vm639_vm9, %v353_v20, 0.0  ;;  %v358_v23 = vsel %vm643_vm10, %v354_v21, 0.0 }
  0x79   : > { %v338_v24 = vrot.slane %v337_v18, 1  ;;  %v345_v25 = vrot.slane %v344_v19, 1  ;;  %v359_v26 = vsel %vm246_vm0, %v357_v22, 0.0  ;;  %v366_v27 = vsel %vm246_vm0, %v358_v23, 0.0 }
  0x7a   : > { %v360_v28 = vrot.slane %v359_v26, 4  ;;  %v367_v29 = vrot.slane %v366_v27, 4 }
  0x7b   : > { %v339_v30 = vadd.f32 %v338_v24, %v337_v18  ;;  %v346_v31 = vadd.f32 %v345_v25, %v344_v19 }
  0x7c   : > { %v361_v32 = vadd.f32 %v360_v28, %v359_v26  ;;  %v368_v33 = vadd.f32 %v367_v29, %v366_v27 }
  0x7d   : > { %546 = vlog2.f32 %v339_v30 }
  0x7e   : > { %548 = vlog2.f32 %v346_v31  ;;  %v362_v34 = vrot.slane %v361_v32, 2  ;;  %v369_v35 = vrot.slane %v368_v33, 2 }
  0x80   : > { %v363_v36 = vadd.f32 %v362_v34, %v361_v32  ;;  %v370_v37 = vadd.f32 %v369_v35, %v368_v33 }
  0x82   : > { %v364_v38 = vrot.slane %v363_v36, 1  ;;  %v371_v39 = vrot.slane %v370_v37, 1 }
  0x83   : > { %v547_v40 = vpop.eup %546 }
  0x84   : > { %v549_v41 = vpop.eup %548  ;;  %v348_v42 = vmul.f32 0.6931472, %v547_v40  ;;  %v365_v43 = vadd.f32 %v364_v38, %v363_v36  ;;  %v372_v44 = vadd.f32 %v371_v39, %v370_v37 }
  0x85   : > { %v350_v45 = vmul.f32 0.6931472, %v549_v41 }
  0x86   : > { %v373_v46 = vsub.f32 %v365_v43, %v348_v42 }
  0x87   : > { %v374_v47 = vsub.f32 %v372_v44, %v350_v45 }
  0x88   : > { %v375_v48 = vmul.f32 1.442695, %v373_v46  ;;  %v383_v56 = vsub.f32 0.0, %v373_v46 }
  0x89   : > { %v377_v49 = vmul.f32 1.442695, %v374_v47  ;;  %v384_v57 = vsub.f32 0.0, %v374_v47 }
  0x8a   : > { %550 = vpow2.f32 %v375_v48 }
  0x8b   : > { %552 = vpow2.f32 %v377_v49 }
  0x90   : > { %v551_v50 = vpop.eup %550 }
  0x91   : > { %v553_v51 = vpop.eup %552  ;;  %v379_v52 = vsub.f32 1.0, %v551_v50 }
  0x92   : > { %v380_v53 = vsub.f32 1.0, %v553_v51 }
  0x93   : > { %v381_v54 = vmul.f32 %v379_v52, %v379_v52 }
  0x94   : > { %v382_v55 = vmul.f32 %v380_v53, %v380_v53 }
  0x95   : > { %v385_v58 = vmul.f32 %v383_v56, %v381_v54 }
  0x96   : > { %v386_v59 = vmul.f32 %v384_v57, %v382_v55 }
  0x97   : > { %v387_v61 = vmul.f32 0.25, %v385_v58 }
  0x98   : > { %v388_v60 = vmul.f32 0.25, %v386_v59 }
  0x9a   : > { %v391_v62 = vrot.slane %v388_v60, 7 }
  0x9c   : > { %v393_v1 = vsel %vm392_vm14, %v387_v61, %v391_v62 }
  0x9d   : > { %v395_v2 = vsel %vm239_vm15, %v393_v1, 0.0 }
  0x9e   : > { %v406_v3 = vadd.f32 %v405_v63, %v395_v2 }
  0xa0   : > { %411 = vst.msk [vmem:[%s637_s23] sm:$0x3] %vm647_vm11, %v406_v3 }
  0xa1 PF: > { %s12_s11 = sadd.s32 1, %s576_s11   ;;  %s684_s9 = smov %s572_s10 }
  0xa2   : > { %p9_p5 = scmp.ge.s32.totalorder %s12_s11, 4   ;;  %s685_s10 = smov %s687_s12 }
  0xa4   :  { %11 = sbr.rel (!%p9_p5) target bundleno = 2 (0x2), region = 65 }

</bundles_post_ra>
